<compile_context>
chip_gen: v7x
topology: tpu7x:2x2x1
jax: 0.10.0
libtpu: 0.0.40
codegen_flags: <defaults>
</compile_context>

<pallas_src>
import functools
import math

import jax
import jax.numpy as jnp
from jax.experimental import pallas as pl
from jax.experimental.pallas import tpu as pltpu


def _round_up(x, m):
    return ((x + m - 1) // m) * m


def _sumexp_kernel(zr_ref, zc_ref, out_ref, *, two_b, tm, tn, inv_temp,
                   has_pad_cols):
    """Accumulate per-row sum_j exp(sim_ij/T - 1/T) over valid, off-diag cols."""
    j = pl.program_id(1)

    @pl.when(j == 0)
    def _init():
        out_ref[...] = jnp.zeros_like(out_ref)

    # One (tm, tn) tile of sim / T on the MXU: bf16 operands (pre-scaled by
    # sqrt(1/T) in the wrapper), f32 accumulation.
    s = jax.lax.dot_general(zr_ref[...], zc_ref[...], (((1,), (1,)), ((), ())),
                            preferred_element_type=jnp.float32)

    r0 = pl.program_id(0) * tm
    c0 = j * tn

    # Masking is only needed on tiles that intersect the diagonal or (if the
    # array is padded) contain pad columns.
    diag_hit = (r0 < c0 + tn) & (c0 < r0 + tm)
    if has_pad_cols:
        slow = diag_hit | (c0 + tn > two_b)
    else:
        slow = diag_hit

    @pl.when(slow)
    def _masked():
        row = r0 + jax.lax.broadcasted_iota(jnp.int32, (tm, 1), 0)
        col = c0 + jax.lax.broadcasted_iota(jnp.int32, (1, tn), 1)
        keep = (row != col) & (col < two_b)
        e = jnp.where(keep, jnp.exp(s - inv_temp), 0.0)
        out_ref[...] += jnp.sum(e, axis=1, keepdims=True)

    @pl.when(jnp.logical_not(slow))
    def _fast():
        out_ref[...] += jnp.sum(jnp.exp(s - inv_temp), axis=1, keepdims=True)


def simclr_loss(z_i, z_j, *, temperature=0.07):
    """NT-Xent loss matching SimCLR_Loss.forward for (B, D) projection pairs."""
    b, d = z_i.shape
    n = 2 * b
    inv_temp = 1.0 / temperature
    scale = math.sqrt(inv_temp)

    # ---- O(N*D) prep in plain JAX (hoisted out of the N^2 grid) -------------
    zi = z_i.astype(jnp.float32)
    zj = z_j.astype(jnp.float32)
    # F.normalize(p=2, dim=1, eps=1e-12) == x * rsqrt(max(sum(x*x), eps^2))
    zi = zi * jax.lax.rsqrt(
        jnp.maximum(jnp.sum(zi * zi, axis=1, keepdims=True), 1e-24))
    zj = zj * jax.lax.rsqrt(
        jnp.maximum(jnp.sum(zj * zj, axis=1, keepdims=True), 1e-24))

    # Positive logits in f32 (same value for row r and row r + B).
    pos = jnp.sum(zi * zj, axis=1) * inv_temp                 # (b,)
    pos = jnp.concatenate([pos, pos], axis=0)                 # (n,)

    # Staged bf16 features with sqrt(1/T) folded in; both halves contiguous at
    # [0, 2B), zero rows only at the tail so pad columns live in the last tiles.
    n_pad = _round_up(n, 128)
    z = jnp.concatenate([zi, zj], axis=0) * scale
    if n_pad != n:
        z = jnp.pad(z, ((0, n_pad - n), (0, 0)))
    z = z.astype(jnp.bfloat16)                                # (n_pad, d)

    # Tile selection: biggest tiles that divide n_pad.
    tm = next(t for t in (512, 256, 128) if n_pad % t == 0)
    tn = next(t for t in (1024, 512, 256, 128) if n_pad % t == 0)
    grid = (n_pad // tm, n_pad // tn)

    # VMEM budget: double-buffered bf16 row/col blocks + f32 tile temporaries.
    d_lanes = _round_up(d, 128)
    vmem_est = 2 * (tm + tn) * d_lanes * 2 + 8 * tm * tn * 4 + (2 << 20)
    vmem_limit = int(min(max(vmem_est, 32 << 20), 64 << 20))

    # TODO(synk): for very large D the contraction dim should itself be tiled;
    #             fine for typical SimCLR projection dims (64-512).
    kernel = functools.partial(_sumexp_kernel, two_b=n, tm=tm, tn=tn,
                               inv_temp=inv_temp, has_pad_cols=(n_pad != n))

    sum_exp = pl.pallas_call(
        kernel,
        out_shape=jax.ShapeDtypeStruct((n_pad, 1), jnp.float32),
        grid_spec=pltpu.PrefetchScalarGridSpec(
            num_scalar_prefetch=0,
            grid=grid,
            in_specs=[pl.BlockSpec((tm, d), lambda i, j: (i, 0)),   # row block
                      pl.BlockSpec((tn, d), lambda i, j: (j, 0))],  # col block
            out_specs=pl.BlockSpec((tm, 1), lambda i, j: (i, 0))),
        compiler_params=pltpu.CompilerParams(
            dimension_semantics=("parallel", "arbitrary"),
            vmem_limit_bytes=vmem_limit),
    )(z, z)

    # ---- tiny O(N) epilogue (constant-max logsumexp finish) -----------------
    lse = inv_temp + jnp.log(sum_exp[:n, 0])
    return jnp.sum(lse - pos) / n


def _reference_loss(z_i, z_j, temperature=0.07):
    # Pure-JAX fp32 reference of the PyTorch forward, for a sanity check.
    b = z_i.shape[0]
    n = 2 * b
    z = jnp.concatenate([z_i, z_j], axis=0).astype(jnp.float32)
    z = z / jnp.maximum(jnp.linalg.norm(z, axis=1, keepdims=True), 1e-12)
    sim = jnp.dot(z, z.T, precision=jax.lax.Precision.HIGHEST) / temperature
    pos = jnp.concatenate(
        [jnp.diagonal(sim, offset=b), jnp.diagonal(sim, offset=-b)], axis=0)
    sim_m = jnp.where(jnp.eye(n, dtype=bool), -jnp.inf, sim)
    lse = jax.scipy.special.logsumexp(sim_m, axis=1)
    return jnp.sum(lse - pos) / n


if __name__ == "__main__":
    key = jax.random.PRNGKey(0)
    k1, k2, k3, k4, k5, k6 = jax.random.split(key, 6)

    # Small shape implied by the module's forward: (B, D) projection pairs.
    z_i = jax.random.normal(k1, (4, 32), dtype=jnp.float32)
    z_j = jax.random.normal(k2, (4, 32), dtype=jnp.float32)
    loss = jax.block_until_ready(simclr_loss(z_i, z_j, temperature=0.07))
    ref = jax.block_until_ready(_reference_loss(z_i, z_j, temperature=0.07))
    # bf16 MXU operands (fp32 accumulation) => bf16-appropriate tolerance.
    assert jnp.allclose(loss, ref, rtol=5e-2, atol=5e-2), (loss, ref)

    # Multi-tile (3, 3) grid with padded rows/cols (n=320 -> n_pad=384).
    z_i2 = jax.random.normal(k3, (160, 32), dtype=jnp.float32)
    z_j2 = jax.random.normal(k4, (160, 32), dtype=jnp.float32)
    loss2 = jax.block_until_ready(simclr_loss(z_i2, z_j2, temperature=0.07))
    ref2 = jax.block_until_ready(_reference_loss(z_i2, z_j2, temperature=0.07))
    assert jnp.allclose(loss2, ref2, rtol=5e-2, atol=5e-2), (loss2, ref2)

    # Exactly tile-aligned case (n=384=n_pad): exercises the unmasked fast path
    # on off-diagonal tiles and the no-pad trace-time branch.
    z_i3 = jax.random.normal(k5, (192, 32), dtype=jnp.float32)
    z_j3 = jax.random.normal(k6, (192, 32), dtype=jnp.float32)
    loss3 = jax.block_until_ready(simclr_loss(z_i3, z_j3, temperature=0.07))
    ref3 = jax.block_until_ready(_reference_loss(z_i3, z_j3, temperature=0.07))
    assert jnp.allclose(loss3, ref3, rtol=5e-2, atol=5e-2), (loss3, ref3)

    print("KERNEL_OK")
</pallas_src>

<mosaic_0001>
module attributes {stable_mosaic.version = 11 : i64} {
  func.func @_sumexp_kernel(%arg0: i32, %arg1: i32, %arg2: memref<128x32xbf16, #tpu.memory_space<vmem>>, %arg3: memref<128x32xbf16, #tpu.memory_space<vmem>>, %arg4: memref<128x1xf32, #tpu.memory_space<vmem>>) attributes {dimension_semantics = [#tpu.dimension_semantics<parallel>, #tpu.dimension_semantics<arbitrary>], iteration_bounds = array<i64: 1, 1>, scalar_prefetch = 0 : i64, scratch_operands = 0 : i64, tpu.core_type = #tpu.core_type<tc>, window_params = [{transform_indices = @transform_0, window_bounds = array<i64: 128, 32>}, {transform_indices = @transform_1, window_bounds = array<i64: 128, 32>}, {transform_indices = @transform_2, window_bounds = array<i64: 128, 1>}]} {
    %c0_i32 = arith.constant 0 : i32
    %0 = arith.cmpi eq, %arg1, %c0_i32 : i32
    %1 = arith.extui %0 : i1 to i32
    %c0_i32_0 = arith.constant 0 : i32
    %2 = arith.cmpi ne, %1, %c0_i32_0 : i32
    scf.if %2 {
      %cst_10 = arith.constant 0.000000e+00 : f32
      %21 = vector.broadcast %cst_10 : f32 to vector<128x1xf32>
      %c0_11 = arith.constant 0 : index
      %c0_12 = arith.constant 0 : index
      %22 = vector.load %arg4[%c0_11, %c0_12] : memref<128x1xf32, #tpu.memory_space<vmem>>, vector<128x1xf32>
      tpu.vector_store %arg4[%c0_11, %c0_12], %21 {strides = array<i32>} : memref<128x1xf32, #tpu.memory_space<vmem>>, vector<128x1xf32>,
    } else {
    }
    %c0 = arith.constant 0 : index
    %c0_1 = arith.constant 0 : index
    %3 = vector.load %arg2[%c0, %c0_1] : memref<128x32xbf16, #tpu.memory_space<vmem>>, vector<128x32xbf16>
    %c0_2 = arith.constant 0 : index
    %c0_3 = arith.constant 0 : index
    %4 = vector.load %arg3[%c0_2, %c0_3] : memref<128x32xbf16, #tpu.memory_space<vmem>>, vector<128x32xbf16>
    %cst = arith.constant dense<0.000000e+00> : vector<128x128xf32>
    %5 = tpu.matmul %3, %4, %cst {dimension_numbers = #tpu.dot_dimension_numbers<[1], [1], [0], [0], [0, 0, 1, 0], [], []>} : vector<128x32xbf16>, vector<128x32xbf16>, vector<128x128xf32> -> vector<128x128xf32>
    %c128_i32 = arith.constant 128 : i32
    %6 = arith.muli %arg0, %c128_i32 : i32
    %c128_i32_4 = arith.constant 128 : i32
    %7 = arith.muli %arg1, %c128_i32_4 : i32
    %c128_i32_5 = arith.constant 128 : i32
    %8 = arith.addi %7, %c128_i32_5 : i32
    %9 = arith.cmpi slt, %6, %8 : i32
    %c128_i32_6 = arith.constant 128 : i32
    %10 = arith.addi %6, %c128_i32_6 : i32
    %11 = arith.cmpi slt, %7, %10 : i32
    %12 = arith.andi %9, %11 : i1
    %c128_i32_7 = arith.constant 128 : i32
    %13 = arith.addi %7, %c128_i32_7 : i32
    %c8_i32 = arith.constant 8 : i32
    %14 = arith.cmpi sgt, %13, %c8_i32 : i32
    %15 = arith.ori %12, %14 : i1
    %16 = arith.extui %15 : i1 to i32
    %c0_i32_8 = arith.constant 0 : i32
    %17 = arith.cmpi ne, %16, %c0_i32_8 : i32
    scf.if %17 {
      %21 = tpu.iota {dimensions = array<i32: 0>} : vector<128x1xi32>
      %22 = vector.broadcast %6 : i32 to vector<128x1xi32>
      %23 = arith.addi %22, %21 : vector<128x1xi32>
      %24 = tpu.iota {dimensions = array<i32: 1>} : vector<1x128xi32>
      %25 = vector.broadcast %7 : i32 to vector<1x128xi32>
      %26 = arith.addi %25, %24 : vector<1x128xi32>
      %27 = vector.broadcast %23 : vector<128x1xi32> to vector<128x128xi32>
      %28 = vector.broadcast %26 : vector<1x128xi32> to vector<128x128xi32>
      %29 = arith.cmpi ne, %27, %28 : vector<128x128xi32>
      %c8_i32_10 = arith.constant 8 : i32
      %30 = vector.broadcast %c8_i32_10 : i32 to vector<1x128xi32>
      %31 = arith.cmpi slt, %26, %30 : vector<1x128xi32>
      %32 = vector.broadcast %31 : vector<1x128xi1> to vector<128x128xi1>
      %33 = arith.andi %29, %32 : vector<128x128xi1>
      %cst_11 = arith.constant 14.2857141 : f32
      %34 = vector.broadcast %cst_11 : f32 to vector<128x128xf32>
      %35 = arith.subf %5, %34 : vector<128x128xf32>
      %36 = math.exp %35 : vector<128x128xf32>
      %cst_12 = arith.constant 0.000000e+00 : f32
      %37 = vector.broadcast %cst_12 : f32 to vector<128x128xf32>
      %38 = arith.select %33, %36, %37 : vector<128x128xi1>, vector<128x128xf32>
      %c0_13 = arith.constant 0 : index
      %c0_14 = arith.constant 0 : index
      %39 = vector.load %arg4[%c0_13, %c0_14] : memref<128x1xf32, #tpu.memory_space<vmem>>, vector<128x1xf32>
      %cst_15 = arith.constant dense<0.000000e+00> : vector<128xf32>
      %40 = vector.multi_reduction <add>, %38, %cst_15 [1] : vector<128x128xf32> to vector<128xf32>
      %41 = vector.shape_cast %40 : vector<128xf32> to vector<128x1xf32>
      %42 = arith.addf %39, %41 : vector<128x1xf32>
      %c0_16 = arith.constant 0 : index
      %c0_17 = arith.constant 0 : index
      %43 = vector.load %arg4[%c0_16, %c0_17] : memref<128x1xf32, #tpu.memory_space<vmem>>, vector<128x1xf32>
      tpu.vector_store %arg4[%c0_16, %c0_17], %42 {strides = array<i32>} : memref<128x1xf32, #tpu.memory_space<vmem>>, vector<128x1xf32>,
    } else {
    }
    %true = arith.constant true
    %18 = arith.xori %15, %true : i1
    %19 = arith.extui %18 : i1 to i32
    %c0_i32_9 = arith.constant 0 : i32
    %20 = arith.cmpi ne, %19, %c0_i32_9 : i32
    scf.if %20 {
      %c0_10 = arith.constant 0 : index
      %c0_11 = arith.constant 0 : index
      %21 = vector.load %arg4[%c0_10, %c0_11] : memref<128x1xf32, #tpu.memory_space<vmem>>, vector<128x1xf32>
      %cst_12 = arith.constant 14.2857141 : f32
      %22 = vector.broadcast %cst_12 : f32 to vector<128x128xf32>
      %23 = arith.subf %5, %22 : vector<128x128xf32>
      %24 = math.exp %23 : vector<128x128xf32>
      %cst_13 = arith.constant dense<0.000000e+00> : vector<128xf32>
      %25 = vector.multi_reduction <add>, %24, %cst_13 [1] : vector<128x128xf32> to vector<128xf32>
      %26 = vector.shape_cast %25 : vector<128xf32> to vector<128x1xf32>
      %27 = arith.addf %21, %26 : vector<128x1xf32>
      %c0_14 = arith.constant 0 : index
      %c0_15 = arith.constant 0 : index
      %28 = vector.load %arg4[%c0_14, %c0_15] : memref<128x1xf32, #tpu.memory_space<vmem>>, vector<128x1xf32>
      tpu.vector_store %arg4[%c0_14, %c0_15], %27 {strides = array<i32>} : memref<128x1xf32, #tpu.memory_space<vmem>>, vector<128x1xf32>,
    } else {
    }
    return
  }
  func.func @transform_0(%arg0: i32, %arg1: i32) -> (i32, i32) {
    %c0_i32 = arith.constant 0 : i32
    %c0_i32_0 = arith.constant 0 : i32
    return %arg0, %c0_i32 : i32, i32
  }
  func.func @transform_1(%arg0: i32, %arg1: i32) -> (i32, i32) {
    %c0_i32 = arith.constant 0 : i32
    %c0_i32_0 = arith.constant 0 : i32
    return %arg1, %c0_i32 : i32, i32
  }
  func.func @transform_2(%arg0: i32, %arg1: i32) -> (i32, i32) {
    %c0_i32 = arith.constant 0 : i32
    %c0_i32_0 = arith.constant 0 : i32
    return %arg0, %c0_i32 : i32, i32
  }
}

</mosaic_0001>

<bundles_post_ra>
// kernel: tpu_custom_call.1
= control target key start
LH: loop header
LB: loop body
LE: loop exit
PB: predicated region body
PF: predicated region fallthrough
CT: control target
= control target key end

     0   :  { %vm145_vm0 = vcmask 261120   ;;  %vm16_vm1 = vcmask 7168   ;;  %v843_v24 = vmov 0.0   ;;  %v304_v25 = vlaneseq  ;;  %s1229_s1 = inlined_call_operand.vmem [shape: bf16[128,32], index: 1, kind: input, shape index: {}]   ;;  %s1230_s0 = inlined_call_operand.vmem [shape: bf16[128,32], index: 0, kind: input, shape index: {}]   ;;  %s1231_s2 = inlined_call_operand.vmem [shape: f32[128,1], index: 2, kind: output, shape index: {}]  }
   0x1   :  { %v795_v0 = vld [vmem:[%s1229_s1] sm:$0xff]   ;;  %v796_v1 = vld [vmem:[%s1229_s1 + $0x8] sm:$0xff]   ;;  %v797_v3 = vld [vmem:[%s1229_s1 + $0x10] sm:$0xff]   ;;  %27 = vst.msk [vmem:[%s1231_s2 + $0x50] sm:$0xff] %vm16_vm1, %v843_v24 }
   0x2   :  { %778 = vmatprep.subr.msk.bf16.mxu0 %vm145_vm0, %v795_v0  ;;  %779 = vmatprep.subr.msk.bf16.mxu1 %vm145_vm0, %v795_v0  ;;  %v171_v2 = vsel %vm145_vm0, %v795_v0, 0  ;;  %v174_v4 = vsel %vm145_vm0, %v796_v1, 0  ;;  %v803_v5 = vld [vmem:[%s1230_s0] sm:$0xff]   ;;  %v177_v7 = vsel %vm145_vm0, %v797_v3, 0  ;;  %v798_v8 = vld [vmem:[%s1229_s1 + $0x18] sm:$0xff]   ;;  %v800_v12 = vld [vmem:[%s1229_s1 + $0x28] sm:$0xff]  }
   0x3   :  { %731 = vmatpush3.bf16.xpose.msra.mxu0 %v171_v2  ;;  %770 = vmatpush3.bf16.xpose.msra.mxu1 %v171_v2  ;;  %v804_v6 = vld [vmem:[%s1230_s0 + $0x20] sm:$0xff]   ;;  %v180_v9 = vsel %vm145_vm0, %v798_v8, 0  ;;  %v186_v13 = vsel %vm145_vm0, %v800_v12, 0  ;;  %v801_v14 = vld [vmem:[%s1229_s1 + $0x30] sm:$0xff]   ;;  %v802_v16 = vld [vmem:[%s1229_s1 + $0x38] sm:$0xff]   ;;  %17 = vst.msk [vmem:[%s1231_s2] sm:$0xff] %vm16_vm1, %v843_v24 }
   0x4   :  { %780 = vmatprep.subr.msk.bf16.mxu0 %vm145_vm0, %v796_v1  ;;  %781 = vmatprep.subr.msk.bf16.mxu1 %vm145_vm0, %v796_v1  ;;  %v799_v10 = vld [vmem:[%s1229_s1 + $0x20] sm:$0xff]   ;;  %v189_v15 = vsel %vm145_vm0, %v801_v14, 0  ;;  %v192_v17 = vsel %vm145_vm0, %v802_v16, 0  ;;  %v805_v18 = vld [vmem:[%s1230_s0 + $0x8] sm:$0xff]   ;;  %v807_v20 = vld [vmem:[%s1230_s0 + $0x10] sm:$0xff]   ;;  %18 = vst.msk [vmem:[%s1231_s2 + $0x8] sm:$0xff] %vm16_vm1, %v843_v24 }
   0x5   :  { %746 = vmatprep.mubr.msk.bf16.mxu0 %vm145_vm0, %v803_v5  ;;  %754 = vmatprep.mubr.msk.bf16.mxu1 %vm145_vm0, %v804_v6  ;;  %v183_v11 = vsel %vm145_vm0, %v799_v10, 0  ;;  %v806_v19 = vld [vmem:[%s1230_s0 + $0x28] sm:$0xff]   ;;  %v809_v21 = vld [vmem:[%s1230_s0 + $0x30] sm:$0xff]   ;;  %v808_v22 = vld [vmem:[%s1230_s0 + $0x18] sm:$0xff]   ;;  %19 = vst.msk [vmem:[%s1231_s2 + $0x10] sm:$0xff] %vm16_vm1, %v843_v24  ;;  %v1003_v35 = vshrl.u32 %v304_v25, 7 }
   0x6   :  { %v810_v23 = vld [vmem:[%s1230_s0 + $0x38] sm:$0xff]   ;;  %20 = vst.msk [vmem:[%s1231_s2 + $0x18] sm:$0xff] %vm16_vm1, %v843_v24  ;;  %21 = vst.msk [vmem:[%s1231_s2 + $0x20] sm:$0xff] %vm16_vm1, %v843_v24  ;;  %v1005_v45 = vand.u32 127, %v304_v25 }
   0x7   :  { %22 = vst.msk [vmem:[%s1231_s2 + $0x28] sm:$0xff] %vm16_vm1, %v843_v24  ;;  %23 = vst.msk [vmem:[%s1231_s2 + $0x30] sm:$0xff] %vm16_vm1, %v843_v24  ;;  %v307_v46 = vadd.s32 16, %v1003_v35  ;;  %v315_v49 = vadd.s32 80, %v1003_v35  ;;  %v308_v58 = vadd.s32 24, %v1003_v35 }
   0x8   :  { %24 = vst.msk [vmem:[%s1231_s2 + $0x38] sm:$0xff] %vm16_vm1, %v843_v24  ;;  %25 = vst.msk [vmem:[%s1231_s2 + $0x40] sm:$0xff] %vm16_vm1, %v843_v24  ;;  %vm358_vm2 = vcmp.lt.s32.totalorder %v1005_v45, 8  ;;  %vm342_vm8 = vcmp.ne.s32.totalorder %v1003_v35, %v1005_v45 }
   0x9   :  { %26 = vst.msk [vmem:[%s1231_s2 + $0x48] sm:$0xff] %vm16_vm1, %v843_v24  ;;  %28 = vst.msk [vmem:[%s1231_s2 + $0x58] sm:$0xff] %vm16_vm1, %v843_v24  ;;  %vm344_vm3 = vcmp.ne.s32.totalorder %v307_v46, %v1005_v45  ;;  %vm352_vm4 = vcmp.ne.s32.totalorder %v315_v49, %v1005_v45  ;;  %vm345_vm7 = vcmp.ne.s32.totalorder %v308_v58, %v1005_v45  ;;  %v318_v49 = vadd.s32 104, %v1003_v35 }
   0xa   :  { %29 = vst.msk [vmem:[%s1231_s2 + $0x60] sm:$0xff] %vm16_vm1, %v843_v24  ;;  %30 = vst.msk [vmem:[%s1231_s2 + $0x68] sm:$0xff] %vm16_vm1, %v843_v24 }
   0xb   :  { %733 = vmatpush3.bf16.xpose.msra.mxu0 %v174_v4  ;;  %771 = vmatpush3.bf16.xpose.msra.mxu1 %v174_v4  ;;  %31 = vst.msk [vmem:[%s1231_s2 + $0x70] sm:$0xff] %vm16_vm1, %v843_v24  ;;  %32 = vst.msk [vmem:[%s1231_s2 + $0x78] sm:$0xff] %vm16_vm1, %v843_v24  ;;  %v316_v4 = vadd.s32 88, %v1003_v35 }
   0xc   :  { %782 = vmatprep.subr.msk.bf16.mxu0 %vm145_vm0, %v797_v3  ;;  %783 = vmatprep.subr.msk.bf16.mxu1 %vm145_vm0, %v797_v3  ;;  %vm1017_vm5 = vmand %vm344_vm3, %vm358_vm2  ;;  %v313_v3 = vadd.s32 64, %v1003_v35  ;;  %v443_v2 = vld [vmem:[%s1231_s2 + $0x10] sm:$0xff] }
   0xd   :  { %vm1023_vm6 = vmand %vm352_vm4, %vm358_vm2  ;;  %vm353_vm11 = vcmp.ne.s32.totalorder %v316_v4, %v1005_v45 }
   0xe   :  { %vm1040_vm9 = vmand %vm345_vm7, %vm358_vm2  ;;  %vm350_vm12 = vcmp.ne.s32.totalorder %v313_v3, %v1005_v45  ;;  %v451_v3 = vld [vmem:[%s1231_s2 + $0x50] sm:$0xff] }
   0xf   :  { %vm1046_vm10 = vmand %vm342_vm8, %vm358_vm2 }
  0x10   :  { %vm1062_vm13 = vmand %vm353_vm11, %vm358_vm2 }
  0x11   :  { %vm1068_vm14 = vmand %vm350_vm12, %vm358_vm2 }
  0x13   :  { %735 = vmatpush3.bf16.xpose.msra.mxu0 %v177_v7  ;;  %772 = vmatpush3.bf16.xpose.msra.mxu1 %v177_v7 }
  0x14   :  { %784 = vmatprep.subr.msk.bf16.mxu0 %vm145_vm0, %v798_v8  ;;  %785 = vmatprep.subr.msk.bf16.mxu1 %vm145_vm0, %v798_v8 }
  0x1b   :  { %737 = vmatpush3.bf16.xpose.msra.mxu0 %v180_v9  ;;  %773 = vmatpush3.bf16.xpose.msra.mxu1 %v180_v9 }
  0x1c   :  { %786 = vmatprep.subr.msk.bf16.mxu0 %vm145_vm0, %v799_v10  ;;  %787 = vmatprep.subr.msk.bf16.mxu1 %vm145_vm0, %v799_v10 }
  0x23   :  { %739 = vmatpush3.bf16.xpose.msra.mxu0 %v183_v11  ;;  %774 = vmatpush3.bf16.xpose.msra.mxu1 %v183_v11 }
  0x24   :  { %788 = vmatprep.subr.msk.bf16.mxu0 %vm145_vm0, %v800_v12  ;;  %789 = vmatprep.subr.msk.bf16.mxu1 %vm145_vm0, %v800_v12 }
  0x2b   :  { %741 = vmatpush3.bf16.xpose.msra.mxu0 %v186_v13  ;;  %775 = vmatpush3.bf16.xpose.msra.mxu1 %v186_v13  ;;  %v452_v13 = vld [vmem:[%s1231_s2 + $0x58] sm:$0xff] }
  0x2c   :  { %790 = vmatprep.subr.msk.bf16.mxu0 %vm145_vm0, %v801_v14  ;;  %791 = vmatprep.subr.msk.bf16.mxu1 %vm145_vm0, %v801_v14 }
  0x33   :  { %743 = vmatpush3.bf16.xpose.msra.mxu0 %v189_v15  ;;  %776 = vmatpush3.bf16.xpose.msra.mxu1 %v189_v15 }
  0x34   :  { %792 = vmatprep.subr.msk.bf16.mxu0 %vm145_vm0, %v802_v16  ;;  %793 = vmatprep.subr.msk.bf16.mxu1 %vm145_vm0, %v802_v16  ;;  %v314_v16 = vadd.s32 72, %v1003_v35 }
  0x36   :  { %vm351_vm15 = vcmp.ne.s32.totalorder %v314_v16, %v1005_v45 }
  0x37   :  { %vm370_vm3 = vmand %vm351_vm15, %vm358_vm2 }
  0x3b   :  { %745 = vmatpush3.bf16.xpose.msra.mxu0 %v192_v17  ;;  %777 = vmatpush3.bf16.xpose.msra.mxu1 %v192_v17  ;;  %v306_v17 = vadd.s32 8, %v1003_v35 }
  0x42   :  { %747 = vmatmul.mubr.msk.bf16.vlgmr.msra.gmra.mrb[0].mxu0 %vm145_vm0, %v805_v18  ;;  %755 = vmatmul.mubr.msk.bf16.vlgmr.msra.gmra.mrb[0].mxu1 %vm145_vm0, %v806_v19 }
  0x43   :  { %750 = vmatprep.mubr.msk.bf16.mxu0 %vm145_vm0, %v807_v20  ;;  %758 = vmatprep.mubr.msk.bf16.mxu1 %vm145_vm0, %v809_v21 }
  0x4a   :  { %751 = vmatmul.mubr.msk.bf16.gmra.mrb[4].mxu0 %vm145_vm0, %v808_v22  ;;  %759 = vmatmul.mubr.msk.bf16.gmra.mrb[4].mxu1 %vm145_vm0, %v810_v23  ;;  %vm343_vm0 = vcmp.ne.s32.totalorder %v306_v17, %v1005_v45 }
  0x4b   :  { %vm362_vm4 = vmand %vm343_vm0, %vm358_vm2 }
 0x115   :  { %v748_v26 = vpop.f32.mrb[0].mxu0  ;;  %v756_v27 = vpop.f32.mrb[0].mxu1 }
 0x116   :  { %v684_v28 = vadd.f32 -14.285714, %v748_v26  ;;  %v692_v29 = vadd.f32 -14.285714, %v756_v27  ;;  %v228_v30 = vpop.f32.mrb[1].mxu0  ;;  %v260_v31 = vpop.f32.mrb[1].mxu1 }
 0x117   :  { %v682_v32 = vadd.f32 -14.285714, %v228_v30  ;;  %v749_v33 = vpop.f32.mrb[2].mxu0  ;;  %v757_v34 = vpop.f32.mrb[2].mxu1  ;;  %v690_v40 = vadd.f32 -14.285714, %v260_v31 }
 0x118   :  { %v397_v36 = vmul.f32 1.442695, %v684_v28  ;;  %v413_v37 = vmul.f32 1.442695, %v692_v29  ;;  %v685_v38 = vadd.f32 -14.285714, %v749_v33 }
 0x119   :  { %v393_v39 = vmul.f32 1.442695, %v682_v32  ;;  %v693_v41 = vadd.f32 -14.285714, %v757_v34  ;;  %v231_v43 = vpop.f32.mrb[3].mxu0  ;;  %v263_v44 = vpop.f32.mrb[3].mxu1 }
 0x11a   :  { %811 = vpow2.f32 %v397_v36  ;;  %v399_v42 = vmul.f32 1.442695, %v685_v38  ;;  %v691_v48 = vadd.f32 -14.285714, %v263_v44  ;;  %v409_v50 = vmul.f32 1.442695, %v690_v40 }
 0x11b   :  { %813 = vpow2.f32 %v413_v37  ;;  %v415_v47 = vmul.f32 1.442695, %v693_v41  ;;  %v683_v51 = vadd.f32 -14.285714, %v231_v43  ;;  %v312_v29 = vadd.s32 56, %v1003_v35  ;;  %v447_v26 = vld [vmem:[%s1231_s2 + $0x30] sm:$0xff] }
 0x11c   :  { %815 = vpow2.f32 %v393_v39  ;;  %v411_v59 = vmul.f32 1.442695, %v691_v48  ;;  %v311_v32 = vadd.s32 48, %v1003_v35  ;;  %v310_v40 = vadd.s32 40, %v1003_v35 }
 0x11d   :  { %v752_v52 = vpop.f32.mrb[4].mxu0  ;;  %v1009_v53 = vpop.f32.mrb[4].mxu1  ;;  %817 = vpow2.f32 %v399_v42  ;;  %v395_v63 = vmul.f32 1.442695, %v683_v51  ;;  %v309_v42 = vadd.s32 32, %v1003_v35 }
 0x11e   :  { %v244_v54 = vpop.f32.mrb[5].mxu0  ;;  %v276_v55 = vpop.f32.mrb[5].mxu1  ;;  %819 = vpow2.f32 %v415_v47  ;;  %v688_v0 = vadd.f32 -14.285714, %v752_v52  ;;  %v696_v33 = vadd.f32 -14.285714, %v1009_v53 }
 0x11f   :  { %v753_v56 = vpop.f32.mrb[6].mxu0  ;;  %v761_v57 = vpop.f32.mrb[6].mxu1  ;;  %821 = vpow2.f32 %v409_v50  ;;  %v686_v10 = vadd.f32 -14.285714, %v244_v54  ;;  %v694_v22 = vadd.f32 -14.285714, %v276_v55 }
 0x120   :  { %v689_v60 = vadd.f32 -14.285714, %v753_v56  ;;  %v247_v61 = vpop.f32.mrb[7].mxu0  ;;  %v279_v62 = vpop.f32.mrb[7].mxu1  ;;  %823 = vpow2.f32 %v411_v59  ;;  %v405_v9 = vmul.f32 1.442695, %v688_v0 }
 0x121   :  { %v687_v7 = vadd.f32 -14.285714, %v247_v61  ;;  %825 = vpow2.f32 %v395_v63  ;;  %v695_v20 = vadd.f32 -14.285714, %v279_v62  ;;  %v401_v21 = vmul.f32 1.442695, %v686_v10 }
 0x122   :  { %v407_v6 = vmul.f32 1.442695, %v689_v60  ;;  %v697_v30 = vadd.f32 -14.285714, %v761_v57  ;;  %v417_v34 = vmul.f32 1.442695, %v694_v22 }
 0x123   :  { %v403_v19 = vmul.f32 1.442695, %v687_v7  ;;  %v419_v31 = vmul.f32 1.442695, %v695_v20  ;;  %v421_v43 = vmul.f32 1.442695, %v696_v33 }
 0x124   :  { %v812_v5 = vpop.eup %811  ;;  %827 = vpow2.f32 %v407_v6  ;;  %v423_v41 = vmul.f32 1.442695, %v697_v30  ;;  %v317_v50 = vadd.s32 96, %v1003_v35  ;;  %v320_v55 = vadd.s32 120, %v1003_v35  ;;  %v442_v20 = vld [vmem:[%s1231_s2 + $0x8] sm:$0xff] }
 0x125   :  { %v814_v8 = vpop.eup %813  ;;  %v427_v11 = vsel %vm1017_vm5, %v812_v5, 0.0  ;;  %829 = vpow2.f32 %v405_v9  ;;  %vm349_vm5 = vcmp.ne.s32.totalorder %v312_v29, %v1005_v45  ;;  %v319_v56 = vadd.s32 112, %v1003_v35 }
 0x126   :  { %v435_v12 = vsel %vm1023_vm6, %v814_v8, 0.0  ;;  %461 = vadd.xlane.f32.xlu1 %v427_v11  ;;  %v816_v14 = vpop.eup %815  ;;  %831 = vpow2.f32 %v403_v19  ;;  %vm348_vm6 = vcmp.ne.s32.totalorder %v311_v32, %v1005_v45  ;;  %vm368_vm7 = vmand %vm349_vm5, %vm358_vm2  ;;  %v441_v8 = vld [vmem:[%s1231_s2] sm:$0xff]  ;;  %v450_v19 = vld [vmem:[%s1231_s2 + $0x48] sm:$0xff] }
 0x127   :  { %477 = vadd.xlane.f32.xlu0 %v435_v12  ;;  %v818_v18 = vpop.eup %817  ;;  %v425_v25 = vsel %vm1046_vm10, %v816_v14, 0.0  ;;  %833 = vpow2.f32 %v401_v21  ;;  %vm367_vm8 = vmand %vm348_vm6, %vm358_vm2  ;;  %vm346_vm10 = vcmp.ne.s32.totalorder %v309_v42, %v1005_v45  ;;  %v449_v14 = vld [vmem:[%s1231_s2 + $0x40] sm:$0xff] }
 0x128   :  { %v428_v23 = vsel %vm1040_vm9, %v818_v18, 0.0  ;;  %v820_v24 = vpop.eup %819  ;;  %835 = vpow2.f32 %v419_v31  ;;  %vm347_vm9 = vcmp.ne.s32.totalorder %v310_v40, %v1005_v45  ;;  %vm365_vm12 = vmand %vm346_vm10, %vm358_vm2  ;;  %v446_v31 = vld [vmem:[%s1231_s2 + $0x28] sm:$0xff]  ;;  %v445_v32 = vld [vmem:[%s1231_s2 + $0x20] sm:$0xff] }
 0x129   :  { %v822_v27 = vpop.eup %821  ;;  %v436_v36 = vsel %vm1062_vm13, %v820_v24, 0.0  ;;  %837 = vpow2.f32 %v417_v34  ;;  %vm366_vm11 = vmand %vm347_vm9, %vm358_vm2  ;;  %vm355_vm13 = vcmp.ne.s32.totalorder %v318_v49, %v1005_v45 }
 0x12a   :  { %463 = vadd.xlane.f32.xlu1 %v428_v23  ;;  %v824_v37 = vpop.eup %823  ;;  %v433_v38 = vsel %vm1068_vm14, %v822_v27, 0.0  ;;  %839 = vpow2.f32 %v423_v41  ;;  %vm354_vm14 = vcmp.ne.s32.totalorder %v317_v50, %v1005_v45  ;;  %vm374_vm15 = vmand %vm355_vm13, %vm358_vm2 }
 0x12b   :  { %457 = vadd.xlane.f32.xlu0 %v425_v25  ;;  %v826_v39 = vpop.eup %825  ;;  %v434_v44 = vsel %vm370_vm3, %v824_v37, 0.0  ;;  %841 = vpow2.f32 %v421_v43  ;;  %vm373_vm0 = vmand %vm354_vm14, %vm358_vm2  ;;  %vm357_vm3 = vcmp.ne.s32.totalorder %v320_v55, %v1005_v45  ;;  %v448_v25 = vld [vmem:[%s1231_s2 + $0x38] sm:$0xff] }
 0x12c   :  { %v426_v47 = vsel %vm362_vm4, %v826_v39, 0.0  ;;  %vm356_vm4 = vcmp.ne.s32.totalorder %v319_v56, %v1005_v45  ;;  %vm376_vm5 = vmand %vm357_vm3, %vm358_vm2  ;;  %v444_v45 = vld [vmem:[%s1231_s2 + $0x18] sm:$0xff]  ;;  %v453_v39 = vld [vmem:[%s1231_s2 + $0x60] sm:$0xff] }
 0x12d   :  { %vm375_vm6 = vmand %vm356_vm4, %vm358_vm2 }
 0x12e   :  { %479 = vadd.xlane.f32.xlu1 %v436_v36  ;;  %v828_v46 = vpop.eup %827 }
 0x12f   :  { %473 = vadd.xlane.f32.xlu0 %v433_v38  ;;  %v830_v48 = vpop.eup %829  ;;  %v432_v51 = vsel %vm368_vm7, %v828_v46, 0.0  ;;  %v454_v38 = vld [vmem:[%s1231_s2 + $0x68] sm:$0xff]  ;;  %v455_v46 = vld [vmem:[%s1231_s2 + $0x70] sm:$0xff] }
 0x130   :  { %v832_v52 = vpop.eup %831  ;;  %v431_v53 = vsel %vm367_vm8, %v830_v48, 0.0 }
 0x131   :  { %v834_v54 = vpop.eup %833  ;;  %v430_v57 = vsel %vm366_vm11, %v832_v52, 0.0 }
 0x132   :  { %475 = vadd.xlane.f32.xlu1 %v434_v44  ;;  %v836_v58 = vpop.eup %835  ;;  %v429_v59 = vsel %vm365_vm12, %v834_v54, 0.0  ;;  %v456_v44 = vld [vmem:[%s1231_s2 + $0x78] sm:$0xff] }
 0x133   :  { %459 = vadd.xlane.f32.xlu0 %v426_v47  ;;  %v838_v60 = vpop.eup %837  ;;  %v438_v61 = vsel %vm374_vm15, %v836_v58, 0.0 }
 0x134   :  { %v840_v62 = vpop.eup %839  ;;  %v437_v63 = vsel %vm373_vm0, %v838_v60, 0.0 }
 0x135   :  { %v842_v35 = vpop.eup %841  ;;  %v440_v0 = vsel %vm376_vm5, %v840_v62, 0.0 }
 0x136   :  { %471 = vadd.xlane.f32.xlu1 %v432_v51  ;;  %v439_v1 = vsel %vm375_vm6, %v842_v35, 0.0 }
 0x137   :  { %469 = vadd.xlane.f32.xlu0 %v431_v53 }
 0x13a   :  { %467 = vadd.xlane.f32.xlu1 %v430_v57 }
 0x13b   :  { %465 = vadd.xlane.f32.xlu0 %v429_v59 }
 0x13e   :  { %483 = vadd.xlane.f32.xlu1 %v438_v61 }
 0x13f   :  { %481 = vadd.xlane.f32.xlu0 %v437_v63 }
 0x142   :  { %487 = vadd.xlane.f32.xlu1 %v440_v0 }
 0x143   :  { %485 = vadd.xlane.f32.xlu0 %v439_v1 }
 0x1b3   :  { %v462_v4 = vpop.xlane.xlu1 %461 }
 0x1b4   :  { %v478_v5 = vpop.xlane.xlu0 %477  ;;  %v491_v6 = vadd.f32 %v462_v4, %v443_v2 }
 0x1b5   :  { %v499_v7 = vadd.f32 %v478_v5, %v451_v3 }
 0x1b6   :  { %508 = vst.msk [vmem:[%s1231_s2 + $0x10] sm:$0xff] %vm16_vm1, %v491_v6 }
 0x1b7   :  { %516 = vst.msk [vmem:[%s1231_s2 + $0x50] sm:$0xff] %vm16_vm1, %v499_v7  ;;  %v464_v9 = vpop.xlane.xlu1 %463 }
 0x1b8   :  { %v458_v10 = vpop.xlane.xlu0 %457  ;;  %v492_v11 = vadd.f32 %v464_v9, %v444_v45 }
 0x1b9   :  { %v489_v12 = vadd.f32 %v458_v10, %v441_v8 }
 0x1ba   :  { %509 = vst.msk [vmem:[%s1231_s2 + $0x18] sm:$0xff] %vm16_vm1, %v492_v11 }
 0x1bb   :  { %506 = vst.msk [vmem:[%s1231_s2] sm:$0xff] %vm16_vm1, %v489_v12  ;;  %v480_v15 = vpop.xlane.xlu1 %479 }
 0x1bc   :  { %v474_v16 = vpop.xlane.xlu0 %473  ;;  %v500_v17 = vadd.f32 %v480_v15, %v452_v13 }
 0x1bd   :  { %v497_v18 = vadd.f32 %v474_v16, %v449_v14 }
 0x1be   :  { %517 = vst.msk [vmem:[%s1231_s2 + $0x58] sm:$0xff] %vm16_vm1, %v500_v17 }
 0x1bf   :  { %514 = vst.msk [vmem:[%s1231_s2 + $0x40] sm:$0xff] %vm16_vm1, %v497_v18  ;;  %v476_v21 = vpop.xlane.xlu1 %475 }
 0x1c0   :  { %v498_v22 = vadd.f32 %v476_v21, %v450_v19  ;;  %v460_v23 = vpop.xlane.xlu0 %459 }
 0x1c1   :  { %v490_v24 = vadd.f32 %v460_v23, %v442_v20 }
 0x1c2   :  { %515 = vst.msk [vmem:[%s1231_s2 + $0x48] sm:$0xff] %vm16_vm1, %v498_v22 }
 0x1c3   :  { %507 = vst.msk [vmem:[%s1231_s2 + $0x8] sm:$0xff] %vm16_vm1, %v490_v24  ;;  %v472_v27 = vpop.xlane.xlu1 %471 }
 0x1c4   :  { %v470_v28 = vpop.xlane.xlu0 %469  ;;  %v496_v29 = vadd.f32 %v472_v27, %v448_v25 }
 0x1c5   :  { %v495_v30 = vadd.f32 %v470_v28, %v447_v26 }
 0x1c6   :  { %513 = vst.msk [vmem:[%s1231_s2 + $0x38] sm:$0xff] %vm16_vm1, %v496_v29 }
 0x1c7   :  { %512 = vst.msk [vmem:[%s1231_s2 + $0x30] sm:$0xff] %vm16_vm1, %v495_v30  ;;  %v468_v33 = vpop.xlane.xlu1 %467 }
 0x1c8   :  { %v466_v34 = vpop.xlane.xlu0 %465  ;;  %v494_v36 = vadd.f32 %v468_v33, %v446_v31 }
 0x1c9   :  { %v493_v37 = vadd.f32 %v466_v34, %v445_v32 }
 0x1ca   :  { %511 = vst.msk [vmem:[%s1231_s2 + $0x28] sm:$0xff] %vm16_vm1, %v494_v36 }
 0x1cb   :  { %510 = vst.msk [vmem:[%s1231_s2 + $0x20] sm:$0xff] %vm16_vm1, %v493_v37  ;;  %v484_v40 = vpop.xlane.xlu1 %483 }
 0x1cc   :  { %v482_v41 = vpop.xlane.xlu0 %481  ;;  %v502_v42 = vadd.f32 %v484_v40, %v454_v38 }
 0x1cd   :  { %v501_v43 = vadd.f32 %v482_v41, %v453_v39 }
 0x1ce   :  { %519 = vst.msk [vmem:[%s1231_s2 + $0x68] sm:$0xff] %vm16_vm1, %v502_v42 }
 0x1cf   :  { %518 = vst.msk [vmem:[%s1231_s2 + $0x60] sm:$0xff] %vm16_vm1, %v501_v43  ;;  %v488_v47 = vpop.xlane.xlu1 %487 }
 0x1d0   :  { %v486_v48 = vpop.xlane.xlu0 %485  ;;  %v504_v49 = vadd.f32 %v488_v47, %v456_v44 }
 0x1d1   :  { %v503_v50 = vadd.f32 %v486_v48, %v455_v46 }
 0x1d2   :  { %521 = vst.msk [vmem:[%s1231_s2 + $0x78] sm:$0xff] %vm16_vm1, %v504_v49 }
 0x1d3   :  { %520 = vst.msk [vmem:[%s1231_s2 + $0x70] sm:$0xff] %vm16_vm1, %v503_v50 }

</bundles_post_ra>
